<compile_context>
chip_gen: v7x
topology: tpu7x:2x2x1
jax: 0.10.0
libtpu: 0.0.40
codegen_flags: <defaults>
</compile_context>

<pallas_src>
import numpy as np
import jax
import jax.numpy as jnp
from jax.experimental import pallas as pl
from jax.experimental.pallas import tpu as pltpu

_LANES = 128


def _round_up(x, m):
    return ((x + m - 1) // m) * m


def _kl_ce_kernel(label_ref, pm_ref, pa_ref, num_ref, den_ref, var_ref):
    num_classes = pm_ref.shape[1]
    s = pl.program_id(2)

    @pl.when(s == 0)
    def _init():
        num_ref[...] = jnp.zeros_like(num_ref)
        den_ref[...] = jnp.zeros_like(den_ref)
        var_ref[...] = jnp.zeros_like(var_ref)

    lab = label_ref[0, 0, :, :]                                  # (R, 128) int32, -1 = padding

    # Cast once per channel slice; all math in f32 on (R,128) tiles, so the
    # channel reductions below are pure elementwise VPU work (no XLU).
    lm = [pm_ref[0, c, :, :].astype(jnp.float32) for c in range(num_classes)]
    la = [pa_ref[0, c, :, :].astype(jnp.float32) for c in range(num_classes)]

    m_max = lm[0]
    a_max = la[0]
    for c in range(1, num_classes):
        m_max = jnp.maximum(m_max, lm[c])
        a_max = jnp.maximum(a_max, la[c])

    sum_em = jnp.zeros_like(m_max)
    sum_ea = jnp.zeros_like(a_max)
    t = jnp.zeros_like(m_max)        # sum_c exp(a_c - a_max) * (a_c - m_c)
    picked = jnp.zeros_like(m_max)   # logits_m[label]
    for c in range(num_classes):
        sum_em = sum_em + jnp.exp(lm[c] - m_max)
        ea_c = jnp.exp(la[c] - a_max)
        sum_ea = sum_ea + ea_c
        t = t + ea_c * (la[c] - lm[c])
        picked = picked + jnp.where(lab == c, lm[c], 0.0)

    lse_m = m_max + jnp.log(sum_em)                              # (R, 128)
    lse_a = a_max + jnp.log(sum_ea)

    # KL(softmax(aux) || softmax(main)) summed over channels, closed form:
    #   sum_c p_aux*(logits_a - logits_m) + lse_m - lse_a
    # (the reference's clip(min=-1e-7) guards are no-ops: softmax > 0 and no
    #  per-element log is taken here)
    variance = t / sum_ea + lse_m - lse_a
    # Cross entropy with integer targets (no class weights): lse_m - logits_m[label]
    ce = lse_m - picked

    valid = (lab >= 0).astype(jnp.float32)                       # mask spatial padding
    w = jnp.exp(-variance) * valid

    # Lane-wide per-(batch, split) partial sums; cross-lane reduce in wrapper.
    num_ref[...] += (ce * w)[None, None]
    den_ref[...] += w[None, None]
    var_ref[...] += (variance * valid)[None, None]


def kl_ce_loss(pred_main, pred_aux, label, *, target_block_bytes=2 << 20):
    """pred_main, pred_aux: [B, C, *spatial] raw logits; label: [B, *spatial] int class ids."""
    # TODO(synk): optional per-class `weight` and CrossEntropyLoss ignore_index semantics
    # are not implemented (reference default path: weight=None, all labels valid).
    B, C = int(pred_main.shape[0]), int(pred_main.shape[1])
    S = int(np.prod(pred_main.shape[2:]))
    in_dtype = jnp.dtype(pred_main.dtype)
    itemsize = in_dtype.itemsize

    L = _LANES
    k_min = max(8, 32 // itemsize)                 # sublane quantum: f32 -> 8, bf16 -> 16
    rows_needed = -(-S // L)
    rows_rounded = _round_up(rows_needed, k_min)

    # Block rows sized so each logits block carries ~target_block_bytes of HBM traffic.
    target_rows = (target_block_bytes // (C * L * itemsize)) // k_min * k_min
    target_rows = int(min(max(target_rows, k_min), 4096))
    R = int(min(target_rows, rows_rounded))

    # Split the spatial block range in two when batch alone cannot occupy both
    # TensorCores of a v7x chip (no effect on single-TC generations).
    n_split = 2 if B < 2 else 1

    n_blocks = _round_up(-(-rows_needed // R), n_split)
    n_s = n_blocks // n_split
    n_rows_pad = n_blocks * R
    S_pad = n_rows_pad * L

    pm = pred_main.reshape(B, C, S)
    pa = pred_aux.reshape(B, C, S)
    lab = label.reshape(B, S).astype(jnp.int32)
    if S_pad != S:
        pad = S_pad - S
        pm = jnp.pad(pm, ((0, 0), (0, 0), (0, pad)))
        pa = jnp.pad(pa, ((0, 0), (0, 0), (0, pad)))
        lab = jnp.pad(lab, ((0, 0), (0, pad)), constant_values=-1)
    pm = pm.reshape(B, C, n_rows_pad, L)
    pa = pa.reshape(B, C, n_rows_pad, L)
    lab = lab.reshape(B, 1, n_rows_pad, L)

    logits_spec = pl.BlockSpec((1, C, R, L), lambda b, c, s: (b, 0, c * n_s + s, 0))
    label_spec = pl.BlockSpec((1, 1, R, L), lambda b, c, s: (b, 0, c * n_s + s, 0))
    out_spec = pl.BlockSpec((1, 1, R, L), lambda b, c, s: (b, c, 0, 0))
    out_shape = tuple(jax.ShapeDtypeStruct((B, n_split, R, L), jnp.float32) for _ in range(3))

    # VMEM budget: double-buffered inputs + label + outputs + in-kernel f32 temps.
    in_blk = C * R * L * itemsize
    row_blk = R * L * 4
    est = 4 * in_blk + 2 * row_blk + 6 * row_blk + 2 * C * R * L * 4 + 10 * row_blk
    vmem_limit = int(min(64 << 20, max(48 << 20, est + (2 << 20))))

    num_p, den_p, var_p = pl.pallas_call(
        _kl_ce_kernel,
        out_shape=out_shape,
        grid_spec=pltpu.PrefetchScalarGridSpec(
            num_scalar_prefetch=0,
            grid=(B, n_split, n_s),
            in_specs=[label_spec, logits_spec, logits_spec],
            out_specs=[out_spec, out_spec, out_spec],
        ),
        compiler_params=pltpu.CompilerParams(
            dimension_semantics=("parallel", "parallel", "arbitrary"),
            vmem_limit_bytes=vmem_limit),
    )(lab, pm, pa)

    num = jnp.sum(num_p, dtype=jnp.float32)
    den = jnp.sum(den_p, dtype=jnp.float32)
    var_sum = jnp.sum(var_p, dtype=jnp.float32)
    return num / den + var_sum / jnp.float32(B * S)


def _ref_loss(pred_main, pred_aux, label):
    """Pure-JAX reference of the PyTorch forward (correctness check)."""
    logp = jax.nn.log_softmax(pred_main.astype(jnp.float32), axis=1)
    ce = -jnp.take_along_axis(logp, label[:, None].astype(jnp.int32), axis=1)[:, 0]
    p_m = jnp.maximum(jax.nn.softmax(pred_main.astype(jnp.float32), axis=1), -1e-7)
    p_a = jnp.maximum(jax.nn.softmax(pred_aux.astype(jnp.float32), axis=1), -1e-7)
    kl = p_a * (jnp.log(p_a) - jnp.log(p_m))
    var = jnp.sum(kl, axis=1)
    ev = jnp.exp(-var)
    return (ce * ev).sum() / ev.sum() + var.mean()


if __name__ == "__main__":
    B, C, H, W = 2, 4, 16, 16
    key = jax.random.PRNGKey(0)
    k1, k2, k3 = jax.random.split(key, 3)
    pred_main = jax.random.normal(k1, (B, C, H, W), dtype=jnp.float32)
    pred_aux = jax.random.normal(k2, (B, C, H, W), dtype=jnp.float32)
    label = jax.random.randint(k3, (B, H, W), 0, C, dtype=jnp.int32)

    loss = jax.block_until_ready(kl_ce_loss(pred_main, pred_aux, label))
    ref = jax.block_until_ready(_ref_loss(pred_main, pred_aux, label))
    np.testing.assert_allclose(np.asarray(loss), np.asarray(ref), rtol=1e-5, atol=1e-5)
    print("KERNEL_OK")
</pallas_src>

<mosaic_0001>
module attributes {stable_mosaic.version = 11 : i64} {
  func.func @_kl_ce_kernel(%arg0: i32, %arg1: i32, %arg2: i32, %arg3: memref<1x1x8x128xi32, #tpu.memory_space<vmem>>, %arg4: memref<1x4x8x128xf32, #tpu.memory_space<vmem>>, %arg5: memref<1x4x8x128xf32, #tpu.memory_space<vmem>>, %arg6: memref<1x1x8x128xf32, #tpu.memory_space<vmem>>, %arg7: memref<1x1x8x128xf32, #tpu.memory_space<vmem>>, %arg8: memref<1x1x8x128xf32, #tpu.memory_space<vmem>>) attributes {dimension_semantics = [#tpu.dimension_semantics<parallel>, #tpu.dimension_semantics<parallel>, #tpu.dimension_semantics<arbitrary>], iteration_bounds = array<i64: 2, 1, 1>, scalar_prefetch = 0 : i64, scratch_operands = 0 : i64, tpu.core_type = #tpu.core_type<tc>, window_params = [{transform_indices = @transform_0, window_bounds = array<i64: 1, 1, 8, 128>}, {transform_indices = @transform_1, window_bounds = array<i64: 1, 4, 8, 128>}, {transform_indices = @transform_2, window_bounds = array<i64: 1, 4, 8, 128>}, {transform_indices = @transform_3, window_bounds = array<i64: 1, 1, 8, 128>}, {transform_indices = @transform_4, window_bounds = array<i64: 1, 1, 8, 128>}, {transform_indices = @transform_5, window_bounds = array<i64: 1, 1, 8, 128>}]} {
    %c0_i32 = arith.constant 0 : i32
    %0 = arith.cmpi eq, %arg2, %c0_i32 : i32
    %1 = arith.extui %0 : i1 to i32
    %c0_i32_0 = arith.constant 0 : i32
    %2 = arith.cmpi ne, %1, %c0_i32_0 : i32
    scf.if %2 {
      %cst_67 = arith.constant 0.000000e+00 : f32
      %117 = vector.broadcast %cst_67 : f32 to vector<1x1x8x128xf32>
      %c0_68 = arith.constant 0 : index
      %c0_69 = arith.constant 0 : index
      %c0_70 = arith.constant 0 : index
      %c0_71 = arith.constant 0 : index
      %118 = vector.load %arg6[%c0_68, %c0_69, %c0_70, %c0_71] : memref<1x1x8x128xf32, #tpu.memory_space<vmem>>, vector<1x1x8x128xf32>
      tpu.vector_store %arg6[%c0_68, %c0_69, %c0_70, %c0_71], %117 {strides = array<i32>} : memref<1x1x8x128xf32, #tpu.memory_space<vmem>>, vector<1x1x8x128xf32>,
      %cst_72 = arith.constant 0.000000e+00 : f32
      %119 = vector.broadcast %cst_72 : f32 to vector<1x1x8x128xf32>
      %c0_73 = arith.constant 0 : index
      %c0_74 = arith.constant 0 : index
      %c0_75 = arith.constant 0 : index
      %c0_76 = arith.constant 0 : index
      %120 = vector.load %arg7[%c0_73, %c0_74, %c0_75, %c0_76] : memref<1x1x8x128xf32, #tpu.memory_space<vmem>>, vector<1x1x8x128xf32>
      tpu.vector_store %arg7[%c0_73, %c0_74, %c0_75, %c0_76], %119 {strides = array<i32>} : memref<1x1x8x128xf32, #tpu.memory_space<vmem>>, vector<1x1x8x128xf32>,
      %cst_77 = arith.constant 0.000000e+00 : f32
      %121 = vector.broadcast %cst_77 : f32 to vector<1x1x8x128xf32>
      %c0_78 = arith.constant 0 : index
      %c0_79 = arith.constant 0 : index
      %c0_80 = arith.constant 0 : index
      %c0_81 = arith.constant 0 : index
      %122 = vector.load %arg8[%c0_78, %c0_79, %c0_80, %c0_81] : memref<1x1x8x128xf32, #tpu.memory_space<vmem>>, vector<1x1x8x128xf32>
      tpu.vector_store %arg8[%c0_78, %c0_79, %c0_80, %c0_81], %121 {strides = array<i32>} : memref<1x1x8x128xf32, #tpu.memory_space<vmem>>, vector<1x1x8x128xf32>,
    } else {
    }
    %c0 = arith.constant 0 : index
    %c0_1 = arith.constant 0 : index
    %c0_2 = arith.constant 0 : index
    %c0_3 = arith.constant 0 : index
    %3 = vector.load %arg3[%c0, %c0_1, %c0_2, %c0_3] : memref<1x1x8x128xi32, #tpu.memory_space<vmem>>, vector<1x1x8x128xi32>
    %4 = vector.shape_cast %3 : vector<1x1x8x128xi32> to vector<8x128xi32>
    %c0_4 = arith.constant 0 : index
    %c0_5 = arith.constant 0 : index
    %c0_6 = arith.constant 0 : index
    %c0_7 = arith.constant 0 : index
    %5 = vector.load %arg4[%c0_4, %c0_5, %c0_6, %c0_7] : memref<1x4x8x128xf32, #tpu.memory_space<vmem>>, vector<1x1x8x128xf32>
    %6 = vector.shape_cast %5 : vector<1x1x8x128xf32> to vector<8x128xf32>
    %c0_8 = arith.constant 0 : index
    %c1 = arith.constant 1 : index
    %c0_9 = arith.constant 0 : index
    %c0_10 = arith.constant 0 : index
    %7 = vector.load %arg4[%c0_8, %c1, %c0_9, %c0_10] : memref<1x4x8x128xf32, #tpu.memory_space<vmem>>, vector<1x1x8x128xf32>
    %8 = vector.shape_cast %7 : vector<1x1x8x128xf32> to vector<8x128xf32>
    %c0_11 = arith.constant 0 : index
    %c2 = arith.constant 2 : index
    %c0_12 = arith.constant 0 : index
    %c0_13 = arith.constant 0 : index
    %9 = vector.load %arg4[%c0_11, %c2, %c0_12, %c0_13] : memref<1x4x8x128xf32, #tpu.memory_space<vmem>>, vector<1x1x8x128xf32>
    %10 = vector.shape_cast %9 : vector<1x1x8x128xf32> to vector<8x128xf32>
    %c0_14 = arith.constant 0 : index
    %c3 = arith.constant 3 : index
    %c0_15 = arith.constant 0 : index
    %c0_16 = arith.constant 0 : index
    %11 = vector.load %arg4[%c0_14, %c3, %c0_15, %c0_16] : memref<1x4x8x128xf32, #tpu.memory_space<vmem>>, vector<1x1x8x128xf32>
    %12 = vector.shape_cast %11 : vector<1x1x8x128xf32> to vector<8x128xf32>
    %c0_17 = arith.constant 0 : index
    %c0_18 = arith.constant 0 : index
    %c0_19 = arith.constant 0 : index
    %c0_20 = arith.constant 0 : index
    %13 = vector.load %arg5[%c0_17, %c0_18, %c0_19, %c0_20] : memref<1x4x8x128xf32, #tpu.memory_space<vmem>>, vector<1x1x8x128xf32>
    %14 = vector.shape_cast %13 : vector<1x1x8x128xf32> to vector<8x128xf32>
    %c0_21 = arith.constant 0 : index
    %c1_22 = arith.constant 1 : index
    %c0_23 = arith.constant 0 : index
    %c0_24 = arith.constant 0 : index
    %15 = vector.load %arg5[%c0_21, %c1_22, %c0_23, %c0_24] : memref<1x4x8x128xf32, #tpu.memory_space<vmem>>, vector<1x1x8x128xf32>
    %16 = vector.shape_cast %15 : vector<1x1x8x128xf32> to vector<8x128xf32>
    %c0_25 = arith.constant 0 : index
    %c2_26 = arith.constant 2 : index
    %c0_27 = arith.constant 0 : index
    %c0_28 = arith.constant 0 : index
    %17 = vector.load %arg5[%c0_25, %c2_26, %c0_27, %c0_28] : memref<1x4x8x128xf32, #tpu.memory_space<vmem>>, vector<1x1x8x128xf32>
    %18 = vector.shape_cast %17 : vector<1x1x8x128xf32> to vector<8x128xf32>
    %c0_29 = arith.constant 0 : index
    %c3_30 = arith.constant 3 : index
    %c0_31 = arith.constant 0 : index
    %c0_32 = arith.constant 0 : index
    %19 = vector.load %arg5[%c0_29, %c3_30, %c0_31, %c0_32] : memref<1x4x8x128xf32, #tpu.memory_space<vmem>>, vector<1x1x8x128xf32>
    %20 = vector.shape_cast %19 : vector<1x1x8x128xf32> to vector<8x128xf32>
    %21 = arith.maximumf %6, %8 : vector<8x128xf32>
    %22 = arith.maximumf %14, %16 : vector<8x128xf32>
    %23 = arith.maximumf %21, %10 : vector<8x128xf32>
    %24 = arith.maximumf %22, %18 : vector<8x128xf32>
    %25 = arith.maximumf %23, %12 : vector<8x128xf32>
    %26 = arith.maximumf %24, %20 : vector<8x128xf32>
    %cst = arith.constant 0.000000e+00 : f32
    %27 = vector.broadcast %cst : f32 to vector<8x128xf32>
    %cst_33 = arith.constant 0.000000e+00 : f32
    %28 = vector.broadcast %cst_33 : f32 to vector<8x128xf32>
    %cst_34 = arith.constant 0.000000e+00 : f32
    %29 = vector.broadcast %cst_34 : f32 to vector<8x128xf32>
    %cst_35 = arith.constant 0.000000e+00 : f32
    %30 = vector.broadcast %cst_35 : f32 to vector<8x128xf32>
    %31 = arith.subf %6, %25 : vector<8x128xf32>
    %32 = math.exp %31 : vector<8x128xf32>
    %33 = arith.addf %27, %32 : vector<8x128xf32>
    %34 = arith.subf %14, %26 : vector<8x128xf32>
    %35 = math.exp %34 : vector<8x128xf32>
    %36 = arith.addf %28, %35 : vector<8x128xf32>
    %37 = arith.subf %14, %6 : vector<8x128xf32>
    %38 = arith.mulf %35, %37 : vector<8x128xf32>
    %39 = arith.addf %29, %38 : vector<8x128xf32>
    %c0_i32_36 = arith.constant 0 : i32
    %40 = vector.broadcast %c0_i32_36 : i32 to vector<8x128xi32>
    %41 = arith.cmpi eq, %4, %40 : vector<8x128xi32>
    %cst_37 = arith.constant 0.000000e+00 : f32
    %42 = vector.broadcast %cst_37 : f32 to vector<8x128xf32>
    %43 = arith.select %41, %6, %42 : vector<8x128xi1>, vector<8x128xf32>
    %44 = arith.addf %30, %43 : vector<8x128xf32>
    %45 = arith.subf %8, %25 : vector<8x128xf32>
    %46 = math.exp %45 : vector<8x128xf32>
    %47 = arith.addf %33, %46 : vector<8x128xf32>
    %48 = arith.subf %16, %26 : vector<8x128xf32>
    %49 = math.exp %48 : vector<8x128xf32>
    %50 = arith.addf %36, %49 : vector<8x128xf32>
    %51 = arith.subf %16, %8 : vector<8x128xf32>
    %52 = arith.mulf %49, %51 : vector<8x128xf32>
    %53 = arith.addf %39, %52 : vector<8x128xf32>
    %c1_i32 = arith.constant 1 : i32
    %54 = vector.broadcast %c1_i32 : i32 to vector<8x128xi32>
    %55 = arith.cmpi eq, %4, %54 : vector<8x128xi32>
    %cst_38 = arith.constant 0.000000e+00 : f32
    %56 = vector.broadcast %cst_38 : f32 to vector<8x128xf32>
    %57 = arith.select %55, %8, %56 : vector<8x128xi1>, vector<8x128xf32>
    %58 = arith.addf %44, %57 : vector<8x128xf32>
    %59 = arith.subf %10, %25 : vector<8x128xf32>
    %60 = math.exp %59 : vector<8x128xf32>
    %61 = arith.addf %47, %60 : vector<8x128xf32>
    %62 = arith.subf %18, %26 : vector<8x128xf32>
    %63 = math.exp %62 : vector<8x128xf32>
    %64 = arith.addf %50, %63 : vector<8x128xf32>
    %65 = arith.subf %18, %10 : vector<8x128xf32>
    %66 = arith.mulf %63, %65 : vector<8x128xf32>
    %67 = arith.addf %53, %66 : vector<8x128xf32>
    %c2_i32 = arith.constant 2 : i32
    %68 = vector.broadcast %c2_i32 : i32 to vector<8x128xi32>
    %69 = arith.cmpi eq, %4, %68 : vector<8x128xi32>
    %cst_39 = arith.constant 0.000000e+00 : f32
    %70 = vector.broadcast %cst_39 : f32 to vector<8x128xf32>
    %71 = arith.select %69, %10, %70 : vector<8x128xi1>, vector<8x128xf32>
    %72 = arith.addf %58, %71 : vector<8x128xf32>
    %73 = arith.subf %12, %25 : vector<8x128xf32>
    %74 = math.exp %73 : vector<8x128xf32>
    %75 = arith.addf %61, %74 : vector<8x128xf32>
    %76 = arith.subf %20, %26 : vector<8x128xf32>
    %77 = math.exp %76 : vector<8x128xf32>
    %78 = arith.addf %64, %77 : vector<8x128xf32>
    %79 = arith.subf %20, %12 : vector<8x128xf32>
    %80 = arith.mulf %77, %79 : vector<8x128xf32>
    %81 = arith.addf %67, %80 : vector<8x128xf32>
    %c3_i32 = arith.constant 3 : i32
    %82 = vector.broadcast %c3_i32 : i32 to vector<8x128xi32>
    %83 = arith.cmpi eq, %4, %82 : vector<8x128xi32>
    %cst_40 = arith.constant 0.000000e+00 : f32
    %84 = vector.broadcast %cst_40 : f32 to vector<8x128xf32>
    %85 = arith.select %83, %12, %84 : vector<8x128xi1>, vector<8x128xf32>
    %86 = arith.addf %72, %85 : vector<8x128xf32>
    %87 = math.log %75 : vector<8x128xf32>
    %88 = arith.addf %25, %87 : vector<8x128xf32>
    %89 = math.log %78 : vector<8x128xf32>
    %90 = arith.addf %26, %89 : vector<8x128xf32>
    %91 = arith.divf %81, %78 : vector<8x128xf32>
    %92 = arith.addf %91, %88 : vector<8x128xf32>
    %93 = arith.subf %92, %90 : vector<8x128xf32>
    %94 = arith.subf %88, %86 : vector<8x128xf32>
    %c0_i32_41 = arith.constant 0 : i32
    %95 = vector.broadcast %c0_i32_41 : i32 to vector<8x128xi32>
    %96 = arith.cmpi sge, %4, %95 : vector<8x128xi32>
    %97 = arith.extui %96 : vector<8x128xi1> to vector<8x128xi32>
    %98 = arith.sitofp %97 : vector<8x128xi32> to vector<8x128xf32>
    %cst_42 = arith.constant 0.000000e+00 : f32
    %99 = vector.broadcast %cst_42 : f32 to vector<8x128xf32>
    %100 = arith.subf %99, %93 : vector<8x128xf32>
    %101 = math.exp %100 : vector<8x128xf32>
    %102 = arith.mulf %101, %98 : vector<8x128xf32>
    %c0_43 = arith.constant 0 : index
    %c0_44 = arith.constant 0 : index
    %c0_45 = arith.constant 0 : index
    %c0_46 = arith.constant 0 : index
    %103 = vector.load %arg6[%c0_43, %c0_44, %c0_45, %c0_46] : memref<1x1x8x128xf32, #tpu.memory_space<vmem>>, vector<1x1x8x128xf32>
    %104 = arith.mulf %94, %102 : vector<8x128xf32>
    %105 = vector.shape_cast %104 : vector<8x128xf32> to vector<1x1x8x128xf32>
    %106 = arith.addf %103, %105 : vector<1x1x8x128xf32>
    %c0_47 = arith.constant 0 : index
    %c0_48 = arith.constant 0 : index
    %c0_49 = arith.constant 0 : index
    %c0_50 = arith.constant 0 : index
    %107 = vector.load %arg6[%c0_47, %c0_48, %c0_49, %c0_50] : memref<1x1x8x128xf32, #tpu.memory_space<vmem>>, vector<1x1x8x128xf32>
    tpu.vector_store %arg6[%c0_47, %c0_48, %c0_49, %c0_50], %106 {strides = array<i32>} : memref<1x1x8x128xf32, #tpu.memory_space<vmem>>, vector<1x1x8x128xf32>,
    %c0_51 = arith.constant 0 : index
    %c0_52 = arith.constant 0 : index
    %c0_53 = arith.constant 0 : index
    %c0_54 = arith.constant 0 : index
    %108 = vector.load %arg7[%c0_51, %c0_52, %c0_53, %c0_54] : memref<1x1x8x128xf32, #tpu.memory_space<vmem>>, vector<1x1x8x128xf32>
    %109 = vector.shape_cast %102 : vector<8x128xf32> to vector<1x1x8x128xf32>
    %110 = arith.addf %108, %109 : vector<1x1x8x128xf32>
    %c0_55 = arith.constant 0 : index
    %c0_56 = arith.constant 0 : index
    %c0_57 = arith.constant 0 : index
    %c0_58 = arith.constant 0 : index
    %111 = vector.load %arg7[%c0_55, %c0_56, %c0_57, %c0_58] : memref<1x1x8x128xf32, #tpu.memory_space<vmem>>, vector<1x1x8x128xf32>
    tpu.vector_store %arg7[%c0_55, %c0_56, %c0_57, %c0_58], %110 {strides = array<i32>} : memref<1x1x8x128xf32, #tpu.memory_space<vmem>>, vector<1x1x8x128xf32>,
    %c0_59 = arith.constant 0 : index
    %c0_60 = arith.constant 0 : index
    %c0_61 = arith.constant 0 : index
    %c0_62 = arith.constant 0 : index
    %112 = vector.load %arg8[%c0_59, %c0_60, %c0_61, %c0_62] : memref<1x1x8x128xf32, #tpu.memory_space<vmem>>, vector<1x1x8x128xf32>
    %113 = arith.mulf %93, %98 : vector<8x128xf32>
    %114 = vector.shape_cast %113 : vector<8x128xf32> to vector<1x1x8x128xf32>
    %115 = arith.addf %112, %114 : vector<1x1x8x128xf32>
    %c0_63 = arith.constant 0 : index
    %c0_64 = arith.constant 0 : index
    %c0_65 = arith.constant 0 : index
    %c0_66 = arith.constant 0 : index
    %116 = vector.load %arg8[%c0_63, %c0_64, %c0_65, %c0_66] : memref<1x1x8x128xf32, #tpu.memory_space<vmem>>, vector<1x1x8x128xf32>
    tpu.vector_store %arg8[%c0_63, %c0_64, %c0_65, %c0_66], %115 {strides = array<i32>} : memref<1x1x8x128xf32, #tpu.memory_space<vmem>>, vector<1x1x8x128xf32>,
    return
  }
  func.func @transform_0(%arg0: i32, %arg1: i32, %arg2: i32) -> (i32, i32, i32, i32) {
    %c1_i32 = arith.constant 1 : i32
    %0 = arith.muli %arg1, %c1_i32 : i32
    %1 = arith.addi %0, %arg2 : i32
    %c0_i32 = arith.constant 0 : i32
    %c0_i32_0 = arith.constant 0 : i32
    %c0_i32_1 = arith.constant 0 : i32
    return %arg0, %c0_i32, %1, %c0_i32_0 : i32, i32, i32, i32
  }
  func.func @transform_1(%arg0: i32, %arg1: i32, %arg2: i32) -> (i32, i32, i32, i32) {
    %c1_i32 = arith.constant 1 : i32
    %0 = arith.muli %arg1, %c1_i32 : i32
    %1 = arith.addi %0, %arg2 : i32
    %c0_i32 = arith.constant 0 : i32
    %c0_i32_0 = arith.constant 0 : i32
    %c0_i32_1 = arith.constant 0 : i32
    return %arg0, %c0_i32, %1, %c0_i32_0 : i32, i32, i32, i32
  }
  func.func @transform_2(%arg0: i32, %arg1: i32, %arg2: i32) -> (i32, i32, i32, i32) {
    %c1_i32 = arith.constant 1 : i32
    %0 = arith.muli %arg1, %c1_i32 : i32
    %1 = arith.addi %0, %arg2 : i32
    %c0_i32 = arith.constant 0 : i32
    %c0_i32_0 = arith.constant 0 : i32
    %c0_i32_1 = arith.constant 0 : i32
    return %arg0, %c0_i32, %1, %c0_i32_0 : i32, i32, i32, i32
  }
  func.func @transform_3(%arg0: i32, %arg1: i32, %arg2: i32) -> (i32, i32, i32, i32) {
    %c0_i32 = arith.constant 0 : i32
    %c0_i32_0 = arith.constant 0 : i32
    %c0_i32_1 = arith.constant 0 : i32
    return %arg0, %arg1, %c0_i32, %c0_i32_0 : i32, i32, i32, i32
  }
  func.func @transform_4(%arg0: i32, %arg1: i32, %arg2: i32) -> (i32, i32, i32, i32) {
    %c0_i32 = arith.constant 0 : i32
    %c0_i32_0 = arith.constant 0 : i32
    %c0_i32_1 = arith.constant 0 : i32
    return %arg0, %arg1, %c0_i32, %c0_i32_0 : i32, i32, i32, i32
  }
  func.func @transform_5(%arg0: i32, %arg1: i32, %arg2: i32) -> (i32, i32, i32, i32) {
    %c0_i32 = arith.constant 0 : i32
    %c0_i32_0 = arith.constant 0 : i32
    %c0_i32_1 = arith.constant 0 : i32
    return %arg0, %arg1, %c0_i32, %c0_i32_0 : i32, i32, i32, i32
  }
}

</mosaic_0001>

<bundles_post_ra>
// kernel: tpu_custom_call.1
= control target key start
LH: loop header
LB: loop body
LE: loop exit
PB: predicated region body
PF: predicated region fallthrough
CT: control target
= control target key end

     0   :  { %s1530_s0 = inlined_call_operand.hbm [shape: s32[2,1,8,128], index: 0, kind: input, shape index: {}]   ;;  %s1531_s1 = inlined_call_operand.hbm [shape: f32[2,4,8,128], index: 1, kind: input, shape index: {}]   ;;  %s1532_s2 = inlined_call_operand.hbm [shape: f32[2,4,8,128], index: 2, kind: input, shape index: {}]   ;;  %s1533_s3 = inlined_call_operand.hbm [shape: f32[2,1,8,128], index: 3, kind: output, shape index: {0}]   ;;  %s1534_s4 = inlined_call_operand.hbm [shape: f32[2,1,8,128], index: 4, kind: output, shape index: {1}]   ;;  %s1535_s5 = inlined_call_operand.hbm [shape: f32[2,1,8,128], index: 5, kind: output, shape index: {2}]  }
   0x1   :  { %1548 = sst [smem:[#allocation21_spill]] %s1531_s1 }
   0x2   :  { %11 = vsyncpa [#allocation3], 0 }
   0x3   :  { %13 = vsyncpa [#allocation3 + $0x1], 0 }
   0x4   :  { %14 = vsyncpa [#allocation6], 0 }
   0x5   :  { %16 = vsyncpa [#allocation6 + $0x1], 0 }
   0x6   :  { %17 = vsyncpa [#allocation4], 0 }
   0x7   :  { %19 = vsyncpa [#allocation4 + $0x1], 0 }
   0x8   :  { %20 = vsyncpa [#allocation10], 0 }
   0x9   :  { %22 = vsyncpa [#allocation10 + $0x1], 0  ;;  %s1165_s18 = smov 0   ;;  %s1167_s19 = smov 0  }
   0xa   :  { %s1169_s20 = smov 0   ;;  %s1171_s21 = smov 0  }
   0xb   :  { %s1173_s22 = smov 0   ;;  %s1175_s23 = smov 0  }
   0xc LB: > { %1549 = sst [smem:[#allocation16_spill]] %s1104_s18  ;;  %s1196_s24 = sadd.s32 4294967295, %s1124_s23   ;;  %s1124_s23 = sphi %s1175_s23, %s28_s23   ;;  %s1120_s22 = sphi %s1173_s22, %s1580_s22   ;;  %s1116_s21 = sphi %s1171_s21, %s1579_s21   ;;  %s1112_s20 = sphi %s1169_s20, %s1575_s20   ;;  %s1108_s19 = sphi %s1167_s19, %s1578_s19   ;;  %s1104_s18 = sphi %s1165_s18, %s1577_s18  }
   0xd   : > { %1550 = sst [smem:[#allocation17_spill]] %s1112_s20  ;;  %s1536_s25 = sadd.s32 4294967294, %s1124_s23  }
   0xe   : > { %s47_s26 = sadd.s32 1, %s1120_s22  ;;  %s58_s27 = sadd.s32 1, %s1112_s20 }
   0xf   : > { %p49_p0 = scmp.ge.s32.totalorder %s47_s26, 2  ;;  %p65_p1 = scmp.ne.s32.totalorder %s1112_s20, %s1108_s19 }
  0x10   : > { %p66_p2 = scmp.eq.s32.totalorder %s1124_s23, 0  ;;  %p71_p3 = scmp.ne.s32.totalorder %s1108_s19, %s1104_s18 }
  0x11   : > { %s1582_s26 = smov (%p49_p0, %s47_s26), 0  ;;  %p72_p5 = scmp.eq.s32.totalorder %s1196_s24, 0 }
  0x12   : > { %1551 = sst [smem:[#allocation18_spill]] %s1582_s26  ;;  %p1208_p4 = por %p66_p2, %p65_p1 }
  0x13   : > { %s53_s29 = ssub.s32 %s1120_s22, %s1582_s26  ;;  %p157_p6 = scmp.eq.s32.totalorder %s1196_s24, 1 }
  0x14   : > { %p56_p7 = scmp.eq.s32.totalorder %s53_s29, 0  ;;  %p1216_p8 = por %p72_p5, %p71_p3 }
  0x15   : > { %p1220_p9 = por %p157_p6, %p65_p1  ;;  %p163_p10 = scmp.eq.s32.totalorder %s1536_s25, 1 }
  0x16   : > { %s1553_s30 = scalar_select %p1216_p8, 1, 0 }
  0x17   : > { %s1554_s6 = scalar_select %p1220_p9, 1, 0 }
  0x18   : > { %s1227_s7 = scalar_select %p56_p7, %s1112_s20, %s58_s27  }
  0x19   : > { %p1229_p11 = por %p163_p10, %p71_p3  ;;  %p811_p13 = scmp.lt.s32.totalorder %s1124_s23, 2 }
  0x1a   : > { %1555 = sst [smem:[#allocation19_spill]] %s1227_s7  ;;  %s1236_s9 = sand.u32 1, %s1112_s20  }
  0x1b   : > { %s1556_s8 = scalar_select %p1229_p11, 1, 0 }
  0x1c   : > { %s259_s10 = sand.u32 1, %s1124_s23   ;;  %s1537_s11 = sshll.u32 %s1236_s9, 5 }
  0x1d   : > { %1557 = sst [smem:[#allocation20_spill]] %s1556_s8  ;;  %p1242_p0 = pnand %p811_p13, %p1208_p4 }
  0x1e   : > { %s1538_s13 = sshll.u32 %s1120_s22, 9  ;;  %s1559_s1 = sld [smem:[#allocation21_spill]] }
  0x1f   : > { %s1558_s12 = scalar_select %p1242_p0, 1, 0 }
  0x20   : > { %s263_s17 = scalar_lea.vmem [#allocation5], %s1537_s11  ;;  %s1258_s28 = scalar_lea.sflag [#allocation6], %s259_s10 }
  0x21   : > { %s272_s27 = sshll.u32 %s263_s17, 4  ;;  %p1264_p2 = pneg %p1242_p0  ;;  %s1256_s27 = int_to_ptr.vmem [resolvable:$true] %s272_s27 }
  0x24   : > { %s1252_s16 = scalar_lea.hbm %s1559_s1, %s1538_s13  ;;  %s893_s11 = scalar_lea.hbm %s1559_s1, 1024 }
  0x25   : > { %s888_s29 = scalar_lea.hbm %s1252_s16, 512  ;;  %p894_p5 = scmp.lt.u32.totalorder %s1252_s16, %s1559_s1 }
  0x26   : > { %p889_p1 = scmp.ne.s32.totalorder %s1252_s16, %s888_s29  ;;  %p895_p6 = scmp.lt.u32.totalorder %s893_s11, %s888_s29 }
  0x27   : > { %p897_p10 = scmp.lt.u32.totalorder %s888_s29, %s1252_s16 }
  0x28   : > { %p891_p3 = pnand %p1264_p2, %p889_p1  ;;  %p896_p7 = por %p895_p6, %p894_p5 }
  0x2a   : > { %p892_p4 = pneg %p891_p3  ;;  %p898_p13 = por %p897_p10, %p896_p7 }
  0x2c   : > { %p899_p12 = pnand %p898_p13, %p892_p4 }
  0x2e   : > { %902 = shalt.err (!%p899_p12)
}
  0x2f   : > { %s903_s10 = scalar_lea.vmem %s1256_s27, 512  ;;  %s1126_s14 = smov [#allocation5]  }
  0x30   : > { %p904_p1 = scmp.ne.s32.totalorder %s1256_s27, %s903_s10  ;;  %s908_s15 = sshll.u32 %s1126_s14, 4  ;;  %s909_s15 = int_to_ptr.vmem [resolvable:$false] %s908_s15 }
  0x31   : > { %s910_s13 = scalar_lea.vmem %s909_s15, 1024  ;;  %p911_p9 = scmp.lt.s32.totalorder %s1256_s27, %s909_s15 }
  0x32   : > { %p906_p3 = pnand %p904_p1, %p1264_p2  ;;  %p912_p8 = scmp.lt.s32.totalorder %s910_s13, %s903_s10 }
  0x34   : > { %p907_p11 = pneg %p906_p3  ;;  %p913_p5 = por %p912_p8, %p911_p9 }
  0x36   : > { %p914_p6 = pnand %p913_p5, %p907_p11 }
  0x38   : > { %917 = shalt.err (!%p914_p6)
}
  0x39   : > { %s1545_s11 = smov 128   ;;  %s1128_s29 = smov 8  }
  0x3a   : > { %797 = dma.hbm_to_vmem [thread:$0]  (!%p1242_p0), %s1252_s16, 512, %s1256_s27, %s1258_s28, %s1545_s11, %s1545_s11, %s1128_s29  }
  0x3b   : > { %s1561_s17 = sshll.u32 %s1120_s22, 9  ;;  %p755_p8 = scmp.ge.s32.totalorder %s1124_s23, 1 }
  0x3c   : > { %s1296_s15 = scalar_lea.hbm %s1532_s2, %s1561_s17  ;;  %s1562_s13 = sshll.u32 %s1236_s9, 5 }
  0x3d   : > { %s286_s1 = scalar_lea.vmem [#allocation7], %s1562_s13  ;;  %p303_p9 = scmp.lt.s32.totalorder %s1124_s23, 3 }
  0x3e   : > { %s295_s26 = sshll.u32 %s286_s1, 4  ;;  %s747_s20 = sshll.u32 %s1236_s9, 3  ;;  %s1313_s26 = int_to_ptr.vmem [resolvable:$true] %s295_s26 }
  0x3f   : > { %p1302_p11 = pnand %p755_p8, %p303_p9  ;;  %s748_s8 = sshll.u32 %s1120_s22, 7 }
  0x40   : > { %s1311_s27 = scalar_lea.hbm %s1530_s0, %s748_s8  ;;  %s243_s17 = scalar_lea.vmem [#allocation2], %s747_s20 }
  0x41   : > { %s1563_s7 = scalar_select %p1302_p11, 1, 0 }
  0x42   : > { %s252_s1 = sshll.u32 %s243_s17, 4  ;;  %s240_s10 = scalar_lea.sflag [#allocation3], %s1236_s9  ;;  %s253_s1 = int_to_ptr.vmem [resolvable:$true] %s252_s1 }
  0x43   : > { %s918_s14 = scalar_lea.hbm %s1311_s27, 128  ;;  %s923_s18 = scalar_lea.hbm %s1530_s0, 256 }
  0x44   : > { %p919_p12 = scmp.ne.s32.totalorder %s1311_s27, %s918_s14  ;;  %p924_p10 = scmp.lt.u32.totalorder %s1311_s27, %s1530_s0 }
  0x45   : > { %p925_p13 = scmp.lt.u32.totalorder %s923_s18, %s918_s14  ;;  %p927_p3 = scmp.lt.u32.totalorder %s918_s14, %s1311_s27 }
  0x46   : > { %p921_p4 = pnand %p919_p12, %p1264_p2 }
  0x47   : > { %p926_p1 = por %p925_p13, %p924_p10 }
  0x48   : > { %p922_p7 = pneg %p921_p4 }
  0x49   : > { %p928_p5 = por %p927_p3, %p926_p1 }
  0x4b   : > { %p929_p6 = pnand %p928_p5, %p922_p7 }
  0x4d   : > { %932 = shalt.err (!%p929_p6)
}
  0x4e   : > { %s933_s20 = scalar_lea.vmem %s253_s1, 128  ;;  %s1129_s9 = smov [#allocation2]  }
  0x4f   : > { %p934_p8 = scmp.ne.s32.totalorder %s253_s1, %s933_s20  ;;  %s938_s17 = sshll.u32 %s1129_s9, 4  ;;  %s939_s17 = int_to_ptr.vmem [resolvable:$false] %s938_s17 }
  0x50   : > { %s940_s11 = scalar_lea.vmem %s939_s17, 256  ;;  %p941_p4 = scmp.lt.s32.totalorder %s253_s1, %s939_s17 }
  0x51   : > { %p936_p9 = pnand %p934_p8, %p1264_p2  ;;  %p942_p11 = scmp.lt.s32.totalorder %s940_s11, %s933_s20 }
  0x53   : > { %p937_p12 = pneg %p936_p9  ;;  %p943_p0 = por %p942_p11, %p941_p4 }
  0x55   : > { %p944_p10 = pnand %p943_p0, %p937_p12 }
  0x57   : > { %947 = shalt.err (!%p944_p10)
}
  0x58   : > { %p1564_p13 = scmp.ne.s32.totalorder %s1558_s12, 0  ;;  %s948_s14 = scalar_lea.hbm %s1296_s15, 512 }
  0x59   : > { %p949_p7 = scmp.ne.s32.totalorder %s1296_s15, %s948_s14  ;;  %s953_s8 = scalar_lea.hbm %s1532_s2, 1024 }
  0x5a   : > { %794 = dma.hbm_to_vmem [thread:$0]  (!%p1564_p13), %s1311_s27, 128, %s253_s1, %s240_s10  }
  0x5b   : > { %p951_p1 = pnand %p949_p7, %p1264_p2  ;;  %p954_p0 = scmp.lt.u32.totalorder %s1296_s15, %s1532_s2 }
  0x5c   : > { %p955_p11 = scmp.lt.u32.totalorder %s953_s8, %s948_s14  ;;  %p957_p6 = scmp.lt.u32.totalorder %s948_s14, %s1296_s15 }
  0x5d   : > { %p952_p3 = pneg %p951_p1 }
  0x5e   : > { %p956_p5 = por %p955_p11, %p954_p0 }
  0x60   : > { %p958_p8 = por %p957_p6, %p956_p5 }
  0x62   : > { %p959_p9 = pnand %p958_p8, %p952_p3 }
  0x64   : > { %962 = shalt.err (!%p959_p9)
}
  0x65   : > { %s963_s27 = scalar_lea.vmem %s1313_s26, 512  ;;  %s1130_s1 = smov [#allocation7]  }
  0x66   : > { %p964_p12 = scmp.ne.s32.totalorder %s1313_s26, %s963_s27  ;;  %s968_s10 = sshll.u32 %s1130_s1, 4  ;;  %s969_s10 = int_to_ptr.vmem [resolvable:$false] %s968_s10 }
  0x67   : > { %s970_s9 = scalar_lea.vmem %s969_s10, 1024  ;;  %p971_p7 = scmp.lt.s32.totalorder %s1313_s26, %s969_s10 }
  0x68   : > { %p966_p4 = pnand %p964_p12, %p1264_p2  ;;  %p972_p1 = scmp.lt.s32.totalorder %s970_s9, %s963_s27 }
  0x6a   : > { %p967_p10 = pneg %p966_p4  ;;  %p973_p0 = por %p972_p1, %p971_p7 }
  0x6c   : > { %p974_p11 = pnand %p973_p0, %p967_p10 }
  0x6e   : > { %977 = shalt.err (!%p974_p11)
}
  0x6f   : > { %s1565_s17 = smov 128   ;;  %p1566_p2 = scmp.ne.s32.totalorder %s1563_s7, 0 }
  0x70   : > { %800 = dma.hbm_to_vmem [thread:$0]  (!%p1564_p13), %s1296_s15, 512, %s1313_s26, %s1258_s28, %s1565_s17, %s1565_s17, %s1128_s29  }
  0x71   : > { %307 = sbr.rel (%p1566_p2) target bundleno = 249 (0xf9), region = 32  ;;  %s1361_s25 = sand.u32 (!%p1566_p2), 1, %s1108_s19  }
  0x72   : > { %s1364_s11 = sshll.u32 (!%p1566_p2), %s1361_s25, 3  ;;  %s310_s12 = scalar_lea.sflag (!%p1566_p2), [#allocation3], %s1361_s25 }
  0x73   : > { %s313_s14 = scalar_lea.vmem (!%p1566_p2), [#allocation2], %s1364_s11  ;;  %p1567_p3 = scmp.ne.s32.totalorder (!%p1566_p2), %s1553_s30, 0 }
  0x78   : > { %1087 = dma.done.wait (%p1567_p3), %s310_s12, 128  }
  0x79   : > { %1089 = vsyncadd (%p1567_p3), %s310_s12, 4294967168  ;;  %s318_s26 = sand.u32 1, %s1196_s24   ;;  %s757_s7 = sshll.u32 %s1361_s25, 5 }
  0x7a   : > { %s319_s28 = scalar_lea.sflag [#allocation6], %s318_s26  ;;  %s322_s29 = scalar_lea.vmem [#allocation5], %s757_s7 }
  0x7b   : > { %1091 = dma.done.wait (%p1567_p3), %s319_s28, 1024  }
  0x7c   : > { %1093 = vsyncadd (%p1567_p3), %s319_s28, 4294966272  ;;  %v1380_v0 = vld [vmem:[%s322_s29] sm:$0xff]  ;;  %v1382_v1 = vld [vmem:[%s322_s29 + $0x8] sm:$0xff]  ;;  %s331_s15 = scalar_lea.vmem [#allocation7], %s757_s7  ;;  %s377_s30 = scalar_lea.vmem [#allocation11], %s1364_s11 }
  0x7d   : > { %v1384_v2 = vld [vmem:[%s322_s29 + $0x10] sm:$0xff]  ;;  %v396_v3 = vld [vmem:[%s331_s15] sm:$0xff]  ;;  %v403_v4 = vmax.f32 %v1380_v0, %v1382_v1  ;;  %v1388_v5 = vld [vmem:[%s322_s29 + $0x18] sm:$0xff]  ;;  %s547_s13 = sshll.u32 %s377_s30, 4  ;;  %s772_s18 = sshll.u32 %s1116_s21, 7  ;;  %s1409_s13 = int_to_ptr.vmem [resolvable:$true] %s547_s13 }
  0x7e   : > { %v765_v6 = vld [vmem:[%s331_s15 + $0x8] sm:$0xff]  ;;  %v766_v7 = vld [vmem:[%s331_s15 + $0x10] sm:$0xff]  ;;  %v767_v10 = vld [vmem:[%s331_s15 + $0x18] sm:$0xff]  ;;  %v417_v33 = vsub.f32 %v396_v3, %v1380_v0  ;;  %s370_s8 = scalar_lea.vmem [#allocation9], %s1364_s11  ;;  %s363_s20 = scalar_lea.vmem [#allocation8], %s1364_s11 }
  0x7f   : > { %v404_v8 = vmax.f32 %v396_v3, %v765_v6  ;;  %v405_v9 = vmax.f32 %v403_v4, %v1384_v2  ;;  %v431_v35 = vsub.f32 %v765_v6, %v1382_v1  ;;  %v445_v45 = vsub.f32 %v766_v7, %v1384_v2  ;;  %v388_v57 = vld [vmem:[%s313_s14] sm:$0xff]  ;;  %s533_s16 = sshll.u32 %s370_s8, 4  ;;  %s519_s27 = sshll.u32 %s363_s20, 4  ;;  %s1419_s16 = int_to_ptr.vmem [resolvable:$true] %s533_s16  ;;  %s1431_s27 = int_to_ptr.vmem [resolvable:$true] %s519_s27 }
  0x80   : > { %v459_v51 = vsub.f32 %v767_v10, %v1388_v5  ;;  %vm420_vm0 = vcmp.eq.s32.totalorder %v388_v57, 0  ;;  %vm434_vm1 = vcmp.eq.s32.totalorder %v388_v57, 1  ;;  %vm476_vm2 = vcmp.ge.s32.totalorder %v388_v57, 0  ;;  %s1417_s9 = scalar_lea.hbm %s1534_s4, %s772_s18  ;;  %s1424_s21 = scalar_lea.hbm %s1535_s5, %s772_s18 }
  0x81   : > { %v406_v11 = vmax.f32 %v404_v8, %v766_v7  ;;  %v407_v12 = vmax.f32 %v405_v9, %v1388_v5  ;;  %v1131_v8 = vmov 0.0   ;;  %vm448_vm3 = vcmp.eq.s32.totalorder %v388_v57, 2  ;;  %s1429_s28 = scalar_lea.hbm %s1533_s3, %s772_s18  ;;  %s1435_s29 = scalar_lea.sflag [#allocation10], %s318_s26 }
  0x82   : > { %v768_v9 = vsel %vm476_vm2, 1.0, %v1131_v8  ;;  %vm462_vm4 = vcmp.eq.s32.totalorder %v388_v57, 3  ;;  %s978_s15 = scalar_lea.vmem %s1419_s16, 128  ;;  %p1568_p5 = scmp.ne.s32.totalorder %s1554_s6, 0 }
  0x83   : > { %v408_v13 = vmax.f32 %v406_v11, %v767_v10  ;;  %v409_v14 = vsub.f32 %v1380_v0, %v407_v12  ;;  %v423_v15 = vsub.f32 %v1382_v1, %v407_v12  ;;  %v437_v16 = vsub.f32 %v1384_v2, %v407_v12  ;;  %p979_p13 = scmp.ne.s32.totalorder %s1419_s16, %s978_s15 }
  0x84   : > { %v451_v17 = vsub.f32 %v1388_v5, %v407_v12 }
  0x85   : > { %v410_v18 = vmul.f32 1.442695, %v409_v14  ;;  %v413_v19 = vsub.f32 %v396_v3, %v408_v13  ;;  %v424_v20 = vmul.f32 1.442695, %v423_v15  ;;  %v427_v21 = vsub.f32 %v765_v6, %v408_v13  ;;  %p980_p6 = pnand %p979_p13, %p1568_p5 }
  0x86   : > { %v441_v22 = vsub.f32 %v766_v7, %v408_v13  ;;  %v455_v23 = vsub.f32 %v767_v10, %v408_v13  ;;  %v438_v26 = vmul.f32 1.442695, %v437_v16  ;;  %v452_v28 = vmul.f32 1.442695, %v451_v17 }
  0x87   : > { %864 = vpow2.f32 %v410_v18  ;;  %v414_v24 = vmul.f32 1.442695, %v413_v19  ;;  %v428_v25 = vmul.f32 1.442695, %v427_v21  ;;  %v421_v6 = vsel %vm420_vm0, %v1380_v0, 0.0  ;;  %p981_p8 = pneg %p980_p6 }
  0x88   : > { %866 = vpow2.f32 %v424_v20  ;;  %v442_v27 = vmul.f32 1.442695, %v441_v22  ;;  %v456_v29 = vmul.f32 1.442695, %v455_v23  ;;  %v435_v7 = vsel %vm434_vm1, %v1382_v1, 0.0 }
  0x89   : > { %868 = vpow2.f32 %v414_v24  ;;  %v463_v1 = vsel %vm462_vm4, %v1388_v5, 0.0 }
  0x8a   : > { %870 = vpow2.f32 %v428_v25 }
  0x8b   : > { %872 = vpow2.f32 %v438_v26 }
  0x8c   : > { %874 = vpow2.f32 %v442_v27 }
  0x8d   : > { %876 = vpow2.f32 %v452_v28 }
  0x8e   : > { %878 = vpow2.f32 %v456_v29 }
  0x91   : > { %v865_v30 = vpop.eup %864 }
  0x92   : > { %v867_v31 = vpop.eup %866 }
  0x93   : > { %v869_v32 = vpop.eup %868  ;;  %v426_v34 = vadd.f32 %v867_v31, %v865_v30 }
  0x94   : > { %v871_v36 = vpop.eup %870  ;;  %v418_v42 = vmul.f32 %v869_v32, %v417_v33 }
  0x95   : > { %v873_v37 = vpop.eup %872  ;;  %v430_v38 = vadd.f32 %v871_v36, %v869_v32  ;;  %v432_v43 = vmul.f32 %v871_v36, %v431_v35 }
  0x96   : > { %v875_v39 = vpop.eup %874  ;;  %v440_v40 = vadd.f32 %v873_v37, %v426_v34 }
  0x97   : > { %v877_v41 = vpop.eup %876  ;;  %v444_v44 = vadd.f32 %v875_v39, %v430_v38  ;;  %v433_v49 = vadd.f32 %v432_v43, %v418_v42  ;;  %v446_v50 = vmul.f32 %v875_v39, %v445_v45 }
  0x98   : > { %v879_v46 = vpop.eup %878  ;;  %v454_v47 = vadd.f32 %v877_v41, %v440_v40 }
  0x99   : > { %v458_v48 = vadd.f32 %v879_v46, %v444_v44  ;;  %v447_v52 = vadd.f32 %v446_v50, %v433_v49  ;;  %v460_v53 = vmul.f32 %v879_v46, %v459_v51 }
  0x9a   : > { %880 = vlog2.f32 %v454_v47 }
  0x9b   : > { %882 = vlog2.f32 %v458_v48  ;;  %v461_v54 = vadd.f32 %v460_v53, %v447_v52 }
  0x9c   : > { %884 = vrcp.f32 %v458_v48 }
  0xa4   : > { %v881_v55 = vpop.eup %880 }
  0xa5   : > { %v883_v56 = vpop.eup %882  ;;  %v466_v58 = vmul.f32 0.6931472, %v881_v55 }
  0xa6   : > { %v885_v59 = vpop.eup %884  ;;  %v469_v60 = vmul.f32 0.6931472, %v883_v56 }
  0xa7   : > { %v467_v61 = vadd.f32 %v466_v58, %v407_v12  ;;  %v472_v62 = vmul.f32 %v885_v59, %v461_v54  ;;  %v436_v12 = vadd.f32 %v435_v7, %v421_v6 }
  0xa8   : > { %v470_v63 = vadd.f32 %v469_v60, %v408_v13  ;;  %v449_v13 = vsel %vm448_vm3, %v1384_v2, 0.0 }
  0xa9   : > { %v473_v3 = vadd.f32 %v472_v62, %v467_v61  ;;  %v450_v0 = vadd.f32 %v449_v13, %v436_v12 }
  0xab   : > { %v474_v4 = vsub.f32 %v473_v3, %v470_v63  ;;  %v464_v15 = vadd.f32 %v463_v1, %v450_v0 }
  0xad   : > { %v479_v10 = vsub.f32 0.0, %v474_v4  ;;  %v491_v11 = vmul.f32 %v768_v9, %v474_v4  ;;  %v475_v16 = vsub.f32 %v467_v61, %v464_v15 }
  0xaf   : > { %v480_v14 = vmul.f32 1.442695, %v479_v10  ;;  %493 = vst [vmem:[%s377_s30] sm:$0xff] %v491_v11  ;;  %s1132_s30 = smov [#allocation9]  }
  0xb0   : > { %s982_s1 = sshll.u32 %s1132_s30, 4  ;;  %s983_s1 = int_to_ptr.vmem [resolvable:$false] %s982_s1 }
  0xb1   : > { %886 = vpow2.f32 %v480_v14  ;;  %s984_s10 = scalar_lea.vmem %s983_s1, 256  ;;  %p985_p9 = scmp.lt.s32.totalorder %s1419_s16, %s983_s1 }
  0xb2   : > { %p986_p12 = scmp.lt.s32.totalorder %s984_s10, %s978_s15 }
  0xb4   : > { %p987_p4 = por %p986_p12, %p985_p9 }
  0xb6   : > { %p988_p10 = pnand %p987_p4, %p981_p8 }
  0xbb   : > { %v887_v17 = vpop.eup %886 }
  0xbc   : > { %v482_v18 = vmul.f32 %v887_v17, %v768_v9 }
  0xbe   : > { %v484_v2 = vmul.f32 %v482_v18, %v475_v16  ;;  %489 = vst [vmem:[%s370_s8] sm:$0xff] %v482_v18 }
  0xbf   : > { %991 = shalt.err (!%p988_p10)
}
  0xc0   : > { %s992_s24 = scalar_lea.hbm %s1417_s9, 128  ;;  %s996_s8 = scalar_lea.hbm %s1534_s4, 256 }
  0xc1   : > { %p993_p7 = scmp.ne.s32.totalorder %s1417_s9, %s992_s24  ;;  %p997_p11 = scmp.lt.u32.totalorder %s1417_s9, %s1534_s4 }
  0xc2   : > { %p998_p2 = scmp.lt.u32.totalorder %s996_s8, %s992_s24  ;;  %p1000_p13 = scmp.lt.u32.totalorder %s992_s24, %s1417_s9 }
  0xc3   : > { %p994_p1 = pnand %p993_p7, %p1568_p5 }
  0xc4   : > { %p999_p3 = por %p998_p2, %p997_p11 }
  0xc5   : > { %p995_p0 = pneg %p994_p1 }
  0xc6   : > { %p1001_p6 = por %p1000_p13, %p999_p3 }
  0xc8   : > { %p1002_p8 = pnand %p1001_p6, %p995_p0 }
  0xca   : > { %1005 = shalt.err (!%p1002_p8)
}
  0xcb   : > { %786 = dma.vmem_to_hbm [thread:$0]  (%p1568_p5), %s1419_s16, 128, %s1417_s9, %s1435_s29   ;;  %486 = vst [vmem:[%s363_s20] sm:$0xff] %v484_v2 }
  0xcc   : > { %s1006_s14 = scalar_lea.vmem %s1409_s13, 128  ;;  %s1133_s7 = smov [#allocation11]  }
  0xcd   : > { %p1007_p9 = scmp.ne.s32.totalorder %s1409_s13, %s1006_s14  ;;  %s1010_s15 = sshll.u32 %s1133_s7, 4  ;;  %s1011_s15 = int_to_ptr.vmem [resolvable:$false] %s1010_s15 }
  0xce   : > { %s1012_s30 = scalar_lea.vmem %s1011_s15, 256  ;;  %p1013_p10 = scmp.lt.s32.totalorder %s1409_s13, %s1011_s15 }
  0xcf   : > { %p1008_p12 = pnand %p1007_p9, %p1568_p5  ;;  %p1014_p7 = scmp.lt.s32.totalorder %s1012_s30, %s1006_s14 }
  0xd1   : > { %p1009_p4 = pneg %p1008_p12  ;;  %p1015_p1 = por %p1014_p7, %p1013_p10 }
  0xd3   : > { %p1016_p0 = pnand %p1015_p1, %p1009_p4 }
  0xd5   : > { %1019 = shalt.err (!%p1016_p0)
}
  0xd6   : > { %s1020_s11 = scalar_lea.hbm %s1424_s21, 128  ;;  %s1024_s9 = scalar_lea.hbm %s1535_s5, 256 }
  0xd7   : > { %p1021_p11 = scmp.ne.s32.totalorder %s1424_s21, %s1020_s11  ;;  %p1025_p13 = scmp.lt.u32.totalorder %s1424_s21, %s1535_s5 }
  0xd8   : > { %p1026_p6 = scmp.lt.u32.totalorder %s1024_s9, %s1020_s11  ;;  %p1028_p9 = scmp.lt.u32.totalorder %s1020_s11, %s1424_s21 }
  0xd9   : > { %p1022_p2 = pnand %p1021_p11, %p1568_p5 }
  0xda   : > { %p1027_p8 = por %p1026_p6, %p1025_p13 }
  0xdb   : > { %p1023_p3 = pneg %p1022_p2 }
  0xdc   : > { %p1029_p12 = por %p1028_p9, %p1027_p8 }
  0xde   : > { %p1030_p4 = pnand %p1029_p12, %p1023_p3 }
  0xe0   : > { %1033 = shalt.err (!%p1030_p4)
}
  0xe1   : > { %787 = dma.vmem_to_hbm [thread:$0]  (%p1568_p5), %s1409_s13, 128, %s1424_s21, %s1435_s29  }
  0xe2   : > { %s495_s24 = scalar_lea.sflag [#allocation4], %s1361_s25  ;;  %s1034_s26 = scalar_lea.vmem %s1431_s27, 128 }
  0xe3   : > { %p1035_p10 = scmp.ne.s32.totalorder %s1431_s27, %s1034_s26  ;;  %s1134_s18 = smov [#allocation8]  }
  0xe4   : > { %s1038_s8 = sshll.u32 %s1134_s18, 4  ;;  %s1039_s8 = int_to_ptr.vmem [resolvable:$false] %s1038_s8 }
  0xe5   : > { %p1036_p7 = pnand %p1035_p10, %p1568_p5  ;;  %s1040_s17 = scalar_lea.vmem %s1039_s8, 256 }
  0xe6   : > { %p1041_p0 = scmp.lt.s32.totalorder %s1431_s27, %s1039_s8  ;;  %p1042_p11 = scmp.lt.s32.totalorder %s1040_s17, %s1034_s26 }
  0xe7   : > { %p1037_p1 = pneg %p1036_p7 }
  0xe8   : > { %p1043_p2 = por %p1042_p11, %p1041_p0 }
  0xea   : > { %p1044_p3 = pnand %p1043_p2, %p1037_p1 }
  0xec   : > { %1047 = shalt.err (!%p1044_p3)
}
  0xed   : > { %s1048_s25 = scalar_lea.hbm %s1429_s28, 128  ;;  %s1052_s29 = scalar_lea.hbm %s1533_s3, 256 }
  0xee   : > { %p1049_p13 = scmp.ne.s32.totalorder %s1429_s28, %s1048_s25  ;;  %p1053_p9 = scmp.lt.u32.totalorder %s1429_s28, %s1533_s3 }
  0xef   : > { %p1054_p12 = scmp.lt.u32.totalorder %s1052_s29, %s1048_s25  ;;  %p1056_p10 = scmp.lt.u32.totalorder %s1048_s25, %s1429_s28 }
  0xf0   : > { %p1050_p6 = pnand %p1049_p13, %p1568_p5 }
  0xf1   : > { %p1055_p4 = por %p1054_p12, %p1053_p9 }
  0xf2   : > { %p1051_p8 = pneg %p1050_p6 }
  0xf3   : > { %p1057_p7 = por %p1056_p10, %p1055_p4 }
  0xf5   : > { %p1058_p1 = pnand %p1057_p7, %p1051_p8 }
  0xf7   : > { %1061 = shalt.err (!%p1058_p1)
}
  0xf8   : > { %785 = dma.vmem_to_hbm [thread:$0]  (%p1568_p5), %s1431_s27, 128, %s1429_s28, %s495_s24  }
  0xf9 PF: > { %s1569_s7 = sld [smem:[#allocation16_spill]]  ;;  %s1570_s15 = sld [smem:[#allocation20_spill]] }
  0xfa   : > { %p1572_p11 = scmp.ge.s32.totalorder %s1124_s23, 2 }
  0xff   : > { %s559_s30 = sand.u32 1, %s1569_s7   ;;  %p1571_p0 = scmp.ne.s32.totalorder %s1570_s15, 0 }
 0x100   : > { %s560_s11 = scalar_lea.sflag [#allocation4], %s559_s30 }
 0x101   : > { %p802_p2 = pnand %p1572_p11, %p1571_p0 }
 0x103   : > { %1095 = dma.done.wait (!%p802_p2), %s560_s11, 128  }
 0x104   : > { %1097 = vsyncadd (!%p802_p2), %s560_s11, 4294967168  ;;  %s1573_s16 = sadd.s32 4294967294, %s1124_s23  }
 0x105   : > { %s568_s20 = sand.u32 1, %s1573_s16  }
 0x106   : > { %s569_s9 = scalar_lea.sflag [#allocation10], %s568_s20 }
 0x107   : > { %1099 = dma.done.wait (!%p802_p2), %s569_s9, 256  }
 0x108   : > { %1101 = vsyncadd (!%p802_p2), %s569_s9, 4294967040  ;;  %s28_s23 = sadd.s32 1, %s1124_s23   ;;  %s1574_s6 = sld [smem:[#allocation17_spill]] }
 0x109   : > { %p25_p5 = scmp.ge.s32.totalorder %s28_s23, 4   ;;  %s1575_s20 = sld [smem:[#allocation19_spill]] }
 0x10a   : > { %s1576_s27 = sld [smem:[#allocation18_spill]]  ;;  %s1577_s18 = smov %s1108_s19 }
 0x10b   : > { %s1579_s21 = smov %s1120_s22  ;;  %27 = sbr.rel (!%p25_p5) target bundleno = 12 (0xc), region = 143 }
 0x10e   : > { %s1578_s19 = smov %s1574_s6 }
 0x110   : > { %s1580_s22 = smov %s1576_s27 }
 0x112   :  { %583 = vsyncpa [#allocation3], 1 }
 0x113   :  { %585 = vsyncpa [#allocation3 + $0x1], 1 }
 0x114   :  { %586 = vsyncpa [#allocation6], 1 }
 0x115   :  { %588 = vsyncpa [#allocation6 + $0x1], 1 }
 0x116   :  { %589 = vsyncpa [#allocation4], 1 }
 0x117   :  { %591 = vsyncpa [#allocation4 + $0x1], 1 }
 0x118   :  { %592 = vsyncpa [#allocation10], 1 }
 0x119   :  { %594 = vsyncpa [#allocation10 + $0x1], 1 }

</bundles_post_ra>
